<compile_context>
chip_gen: v6e
topology: v6e:2x2x1
jax: 0.10.0
libtpu: 0.0.40
codegen_flags: <defaults>
</compile_context>

<pallas_src>
import functools

import numpy as np
import jax
import jax.numpy as jnp
from jax import lax
from jax.experimental import pallas as pl
from jax.experimental.pallas import tpu as pltpu

_LANE = 128
_F32_TEMPS = 6           # conservative count of live f32 [TB, C] temporaries


def _round_up(v, m):
    return ((v + m - 1) // m) * m


def _softplus(x):
    # numerically stable softplus(x) = max(x, 0) + log1p(exp(-|x|))
    return jnp.maximum(x, 0.0) + jnp.log1p(jnp.exp(-jnp.abs(x)))


def _cb_loss_kernel(*refs, loss_type, gamma, class_balanced, labels_are_indices,
                    batch, num_classes, block_rows, ragged):
    if class_balanced:
        logits_ref, labels_ref, w_ref, o_ref, acc_ref = refs
    else:
        logits_ref, labels_ref, o_ref, acc_ref = refs
        w_ref = None

    pid = pl.program_id(0)
    nsteps = pl.num_programs(0)

    @pl.when(pid == 0)
    def _init():
        acc_ref[...] = jnp.zeros_like(acc_ref)

    x = logits_ref[...].astype(jnp.float32)                    # [TB, C]

    if labels_are_indices:
        idx = labels_ref[...]                                  # [TB, 1] int32
        cols = lax.broadcasted_iota(jnp.int32, (block_rows, num_classes), 1)
        y = (cols == idx).astype(jnp.float32)                  # one-hot in-kernel
    else:
        y = labels_ref[...].astype(jnp.float32)                # [TB, C]

    if ragged:
        # Last block overruns the batch: those rows hold unspecified data.
        # Sanitize BEFORE any math so NaN/Inf garbage cannot leak into sums.
        row0 = pid * block_rows
        rows = row0 + lax.broadcasted_iota(jnp.int32, (block_rows, 1), 0)
        valid = rows < batch                                   # [TB, 1] bool
        mask_f = valid.astype(jnp.float32)                     # [TB, 1]
        x = jnp.where(valid, x, 0.0)
        y = jnp.where(valid, y, 0.0)
    else:
        mask_f = None

    if loss_type == 'cross_entropy':
        # F.cross_entropy with probability targets (+ optional per-class weight):
        #   mean_b [ -sum_c w[c] * y[b,c] * log_softmax(x)[b,c] ]
        # Accumulate unweighted per-class partials; apply w once at the end.
        m = jnp.max(x, axis=1, keepdims=True)
        z = x - m
        lse = jnp.log(jnp.sum(jnp.exp(z), axis=1, keepdims=True))      # [TB,1]
        contrib = jnp.sum(y * (lse - z), axis=0, keepdims=True)        # [1, C]
        acc_ref[...] += contrib

        @pl.when(pid == nsteps - 1)
        def _finish_ce():
            per_class = acc_ref[...]                                    # [1, C]
            if class_balanced:
                per_class = per_class * w_ref[...].astype(jnp.float32)
            total = jnp.sum(per_class, axis=1, keepdims=True)           # (1, 1)
            o_ref[...] = total * (1.0 / float(batch))

    else:
        if loss_type in ('binary_cross_entropy', 'focal_loss'):
            sp = _softplus(x)
            per_el = sp - x * y                                # BCE-with-logits
            if loss_type == 'focal_loss' and gamma != 0.0:
                # log(1 + exp(-x)) == softplus(x) - x
                modulator = jnp.exp(-gamma * (y * x + sp - x))
                per_el = modulator * per_el
        elif loss_type == 'softmax_binary_cross_entropy':
            m = jnp.max(x, axis=1, keepdims=True)
            z = x - m
            e = jnp.exp(z)
            s = jnp.sum(e, axis=1, keepdims=True)
            p = e / s
            # PyTorch BCE clamps log terms at -100.
            log_p = jnp.maximum(z - jnp.log(s), -100.0)
            log_1mp = jnp.maximum(jnp.log(1.0 - p), -100.0)
            per_el = -(y * log_p + (1.0 - y) * log_1mp)
        else:
            raise ValueError(f"unknown loss_type {loss_type}")

        # Reduce over classes first, then apply row scalars (alpha / mask) on
        # the cheap [TB, 1] column instead of the full [TB, C] tile.
        row_sum = jnp.sum(per_el, axis=1, keepdims=True)       # [TB, 1]
        if class_balanced:
            w = w_ref[...].astype(jnp.float32)                 # [1, C]
            alpha = jnp.sum(w * y, axis=1, keepdims=True)      # [TB, 1]
            row_sum = row_sum * alpha
        if ragged:
            row_sum = row_sum * mask_f
        acc_ref[0:1, :] += jnp.sum(row_sum, axis=0, keepdims=True)      # num
        if loss_type == 'focal_loss':
            den_rows = jnp.sum(y, axis=1, keepdims=True)       # pad rows are 0
            acc_ref[1:2, :] += jnp.sum(den_rows, axis=0, keepdims=True)

        @pl.when(pid == nsteps - 1)
        def _finish_other():
            num = acc_ref[0:1, :]                              # (1, 1)
            if loss_type == 'focal_loss':
                o_ref[...] = num / acc_ref[1:2, :]
            else:  # (softmax_)binary_cross_entropy, reduction='mean'
                o_ref[...] = num * (1.0 / float(batch * num_classes))


def _vmem_tile_budget_bytes():
    """Per-step VMEM budget for (double-buffered inputs + f32 temporaries)."""
    try:
        kind = jax.devices()[0].device_kind.lower()
    except Exception:
        kind = ''
    if 'v5 lite' in kind or 'v5e' in kind:
        # ~0.82 TB/s: small steps already amortize the 0.35 us overhead;
        # keep headroom for the f32 intermediates instead.
        return 12 * 1024 * 1024
    # v6e / v7x: larger tiles amortize per-step overhead; still leaves the
    # total scoped request well under v7x's 64 MiB physical VMEM.
    return 24 * 1024 * 1024


class CBLossPallas:
    """Pallas/JAX port of the PyTorch CBLoss module (forward only).

    Accepts labels either as [B, C] one-hot / soft targets (any float or int8
    dtype) or as [B] integer class indices (one-hot is built in-kernel).
    """

    def __init__(self, loss_type='cross_entropy', beta=0.999, fl_gamma=2,
                 samples_per_class=None, class_balanced=False, block_rows=None):
        if class_balanced and samples_per_class is None:
            raise ValueError('samples_per_class cannot be None when class_balanced is True')
        self.loss_type = loss_type
        self.beta = beta
        self.fl_gamma = fl_gamma
        self.samples_per_class = samples_per_class
        self.class_balanced = class_balanced
        self.block_rows = block_rows   # optional override (testing / tuning)

    def _weights_row(self, num_classes):
        effective_num = 1.0 - np.power(self.beta, self.samples_per_class)
        w = (1.0 - self.beta) / np.asarray(effective_num)
        w = w / np.sum(w) * num_classes
        return jnp.asarray(w, jnp.float32).reshape(1, num_classes)

    def _pick_block_rows(self, B, C, logits_isz, labels_row_bytes):
        if self.block_rows is not None:
            tb = int(self.block_rows)
        else:
            c_pad = _round_up(C, _LANE)
            per_row = 2 * (c_pad * logits_isz + labels_row_bytes) \
                + _F32_TEMPS * c_pad * 4
            tb = max(8, _vmem_tile_budget_bytes() // per_row)
        tb = min(tb, 8192)
        if tb >= B:
            return B, 1, False
        tb = max(8, (tb // 8) * 8)
        steps = -(-B // tb)
        return tb, steps, (steps * tb != B)

    def __call__(self, logits, labels):
        logits = jnp.asarray(logits)
        labels = jnp.asarray(labels)
        if logits.dtype.name not in ('float32', 'bfloat16'):
            logits = logits.astype(jnp.float32)
        B, C = logits.shape

        labels_are_indices = (labels.ndim == 1)
        if labels_are_indices:
            labels_in = labels.astype(jnp.int32).reshape(B, 1)
            labels_row_bytes = _LANE * 4               # (tb,1) int32, lane-padded
        else:
            if labels.dtype.name in ('float32', 'bfloat16', 'int8'):
                labels_in = labels                     # stream narrow; cast in-kernel
            else:
                labels_in = labels.astype(jnp.float32)
            labels_row_bytes = _round_up(C, _LANE) * jnp.dtype(labels_in.dtype).itemsize

        logits_isz = jnp.dtype(logits.dtype).itemsize
        tb, steps, ragged = self._pick_block_rows(B, C, logits_isz, labels_row_bytes)

        inputs = [logits, labels_in]
        in_specs = [pl.BlockSpec((tb, C), lambda i: (i, 0))]
        if labels_are_indices:
            in_specs.append(pl.BlockSpec((tb, 1), lambda i: (i, 0)))
        else:
            in_specs.append(pl.BlockSpec((tb, C), lambda i: (i, 0)))
        if self.class_balanced:
            inputs.append(self._weights_row(C))               # resident [1, C]
            in_specs.append(pl.BlockSpec((1, C), lambda i: (0, 0)))

        if self.loss_type == 'cross_entropy':
            acc_shape = (1, C)        # per-class partials
        else:
            acc_shape = (2, 1)        # [num, den]

        kernel = functools.partial(
            _cb_loss_kernel,
            loss_type=self.loss_type,
            gamma=float(self.fl_gamma),
            class_balanced=self.class_balanced,
            labels_are_indices=labels_are_indices,
            batch=B,
            num_classes=C,
            block_rows=tb,
            ragged=ragged,
        )

        # VMEM limit: double-buffered input tiles + f32 compute temporaries
        # (lane-padded), plus weights/accumulator and margin; cap at 48 MiB so
        # it stays safe on v7x's 64 MiB physical VMEM.
        c_pad = _round_up(C, _LANE)
        in_tile = tb * c_pad * logits_isz + tb * labels_row_bytes
        temps = _F32_TEMPS * tb * c_pad * 4
        vmem_est = 2 * in_tile + temps + 4 * c_pad * 4 + (2 << 20)
        vmem_limit = int(min(48 << 20, max(16 << 20, vmem_est + (4 << 20))))

        out = pl.pallas_call(
            kernel,
            out_shape=jax.ShapeDtypeStruct((1, 1), jnp.float32),
            grid_spec=pltpu.PrefetchScalarGridSpec(
                num_scalar_prefetch=0,
                grid=(steps,),
                in_specs=in_specs,
                out_specs=pl.BlockSpec((1, 1), lambda i: (0, 0)),
                scratch_shapes=[pltpu.VMEM(acc_shape, jnp.float32)],
            ),
            compiler_params=pltpu.CompilerParams(
                dimension_semantics=("arbitrary",),
                vmem_limit_bytes=vmem_limit,
            ),
        )(*inputs)
        return out[0, 0]


# ---------------- pure-JAX references (for correctness check only) -------------

def _cb_weights(beta, samples_per_class, num_classes):
    eff = 1.0 - np.power(beta, samples_per_class)
    w = (1.0 - beta) / np.asarray(eff)
    w = w / np.sum(w) * num_classes
    return jnp.asarray(w, jnp.float32)


def _ref_cross_entropy(logits, labels, w=None):
    logp = jax.nn.log_softmax(logits.astype(jnp.float32), axis=1)
    if w is None:
        return -jnp.mean(jnp.sum(labels * logp, axis=1))
    return -jnp.mean(jnp.sum(w[None, :] * labels * logp, axis=1))


def _ref_bce_with_logits(logits, labels, alpha=None):
    x, y = logits.astype(jnp.float32), labels
    bce = jnp.maximum(x, 0.0) - x * y + jnp.log1p(jnp.exp(-jnp.abs(x)))
    if alpha is not None:
        bce = alpha * bce
    return jnp.mean(bce)


def _ref_softmax_bce(logits, labels):
    p = jax.nn.softmax(logits.astype(jnp.float32), axis=1)
    log_p = jnp.maximum(jnp.log(p), -100.0)
    log_1mp = jnp.maximum(jnp.log(1.0 - p), -100.0)
    return jnp.mean(-(labels * log_p + (1.0 - labels) * log_1mp))


def _ref_focal_cb(logits, labels, beta, gamma, samples_per_class):
    B, C = logits.shape
    w = _cb_weights(beta, samples_per_class, C)
    alpha = jnp.sum(w[None, :] * labels, axis=1, keepdims=True)
    x, y = logits.astype(jnp.float32), labels
    bce = jnp.maximum(x, 0.0) - x * y + jnp.log1p(jnp.exp(-jnp.abs(x)))
    mod = jnp.exp(-gamma * y * x - gamma * jnp.log1p(jnp.exp(-x)))
    return jnp.sum(alpha * mod * bce) / jnp.sum(y)


if __name__ == "__main__":
    key = jax.random.PRNGKey(0)
    k1, k2, k3, k4 = jax.random.split(key, 4)

    B, C = 8, 16
    logits = jax.random.normal(k1, (B, C), dtype=jnp.float32)
    label_idx = jax.random.randint(k2, (B,), 0, C)
    labels = jax.nn.one_hot(label_idx, C, dtype=jnp.float32)
    samples_per_class = [10, 20, 30, 40, 50, 60, 70, 80, 90, 100,
                         15, 25, 35, 45, 55, 65]

    # 1) default cross_entropy (no class balancing), f32 labels
    ce = jax.block_until_ready(CBLossPallas('cross_entropy')(logits, labels))
    np.testing.assert_allclose(np.asarray(ce), np.asarray(_ref_cross_entropy(logits, labels)),
                               rtol=1e-5, atol=1e-6)

    # 2) bf16 logits AND bf16 labels streamed directly; cast happens in-kernel
    ce_bf16 = jax.block_until_ready(
        CBLossPallas('cross_entropy')(logits.astype(jnp.bfloat16),
                                      labels.astype(jnp.bfloat16)))
    ref_bf16 = _ref_cross_entropy(logits.astype(jnp.bfloat16).astype(jnp.float32), labels)
    np.testing.assert_allclose(np.asarray(ce_bf16), np.asarray(ref_bf16),
                               rtol=1e-5, atol=1e-6)

    # 3) integer class-index labels ([B] int32): one-hot built in-kernel
    ce_idx = jax.block_until_ready(CBLossPallas('cross_entropy')(logits, label_idx))
    np.testing.assert_allclose(np.asarray(ce_idx),
                               np.asarray(_ref_cross_entropy(logits, labels)),
                               rtol=1e-5, atol=1e-6)

    # 4) class-balanced cross_entropy (resident [1,C] weight row)
    ce_cb = jax.block_until_ready(
        CBLossPallas('cross_entropy', beta=0.999,
                     samples_per_class=samples_per_class,
                     class_balanced=True)(logits, labels))
    np.testing.assert_allclose(
        np.asarray(ce_cb),
        np.asarray(_ref_cross_entropy(logits, labels,
                                      _cb_weights(0.999, samples_per_class, C))),
        rtol=1e-5, atol=1e-6)

    # 5) class-balanced focal loss
    fl = jax.block_until_ready(
        CBLossPallas('focal_loss', beta=0.999, fl_gamma=2,
                     samples_per_class=samples_per_class,
                     class_balanced=True)(logits, labels))
    np.testing.assert_allclose(np.asarray(fl),
                               np.asarray(_ref_focal_cb(logits, labels, 0.999, 2.0,
                                                        samples_per_class)),
                               rtol=1e-5, atol=1e-6)

    # 6) BCE and softmax-BCE (no class balancing)
    bce = jax.block_until_ready(CBLossPallas('binary_cross_entropy')(logits, labels))
    np.testing.assert_allclose(np.asarray(bce),
                               np.asarray(_ref_bce_with_logits(logits, labels)),
                               rtol=1e-5, atol=1e-6)
    sbce = jax.block_until_ready(
        CBLossPallas('softmax_binary_cross_entropy')(logits, labels))
    np.testing.assert_allclose(np.asarray(sbce),
                               np.asarray(_ref_softmax_bce(logits, labels)),
                               rtol=1e-5, atol=1e-6)

    # 7) gridded + ragged batch (B not a multiple of the block): exercises the
    #    cross-step VMEM accumulator and the in-kernel mask (no host padding).
    B2 = 20
    logits2 = jax.random.normal(k3, (B2, C), dtype=jnp.float32)
    label_idx2 = jax.random.randint(k4, (B2,), 0, C)
    labels2 = jax.nn.one_hot(label_idx2, C, dtype=jnp.float32)

    bce_grid = jax.block_until_ready(
        CBLossPallas('binary_cross_entropy', block_rows=8)(logits2, labels2))
    np.testing.assert_allclose(np.asarray(bce_grid),
                               np.asarray(_ref_bce_with_logits(logits2, labels2)),
                               rtol=1e-5, atol=1e-6)

    fl_grid = jax.block_until_ready(
        CBLossPallas('focal_loss', beta=0.999, fl_gamma=2,
                     samples_per_class=samples_per_class,
                     class_balanced=True, block_rows=8)(logits2, labels2))
    np.testing.assert_allclose(np.asarray(fl_grid),
                               np.asarray(_ref_focal_cb(logits2, labels2, 0.999, 2.0,
                                                        samples_per_class)),
                               rtol=1e-5, atol=1e-6)

    ce_grid = jax.block_until_ready(
        CBLossPallas('cross_entropy', block_rows=8)(logits2, labels2))
    np.testing.assert_allclose(np.asarray(ce_grid),
                               np.asarray(_ref_cross_entropy(logits2, labels2)),
                               rtol=1e-5, atol=1e-6)

    # 8) gridded + ragged + integer-index labels + class-balanced focal loss
    fl_grid_idx = jax.block_until_ready(
        CBLossPallas('focal_loss', beta=0.999, fl_gamma=2,
                     samples_per_class=samples_per_class,
                     class_balanced=True, block_rows=8)(logits2, label_idx2))
    np.testing.assert_allclose(np.asarray(fl_grid_idx),
                               np.asarray(_ref_focal_cb(logits2, labels2, 0.999, 2.0,
                                                        samples_per_class)),
                               rtol=1e-5, atol=1e-6)

    print("KERNEL_OK")
</pallas_src>

<mosaic_0001>
module attributes {stable_mosaic.version = 11 : i64} {
  func.func @_cb_loss_kernel(%arg0: i32, %arg1: memref<8x16xf32, #tpu.memory_space<vmem>>, %arg2: memref<8x16xf32, #tpu.memory_space<vmem>>, %arg3: memref<1x1xf32, #tpu.memory_space<vmem>>, %arg4: memref<1x16xf32, #tpu.memory_space<vmem>>) attributes {dimension_semantics = [#tpu.dimension_semantics<arbitrary>], iteration_bounds = array<i64: 1>, scalar_prefetch = 0 : i64, scratch_operands = 1 : i64, tpu.core_type = #tpu.core_type<tc>, window_params = [{transform_indices = @transform_0, window_bounds = array<i64: 8, 16>}, {transform_indices = @transform_1, window_bounds = array<i64: 8, 16>}, {pipeline_mode = #tpu.pipeline_mode<synchronous>, transform_indices = @transform_2, window_bounds = array<i64: 1, 1>}]} {
    %c0_i32 = arith.constant 0 : i32
    %0 = arith.cmpi eq, %arg0, %c0_i32 : i32
    %1 = arith.extui %0 : i1 to i32
    %c0_i32_0 = arith.constant 0 : i32
    %2 = arith.cmpi ne, %1, %c0_i32_0 : i32
    scf.if %2 {
      %cst_12 = arith.constant 0.000000e+00 : f32
      %24 = vector.broadcast %cst_12 : f32 to vector<1x16xf32>
      %c0_13 = arith.constant 0 : index
      %c0_14 = arith.constant 0 : index
      %25 = vector.load %arg4[%c0_13, %c0_14] : memref<1x16xf32, #tpu.memory_space<vmem>>, vector<1x16xf32>
      tpu.vector_store %arg4[%c0_13, %c0_14], %24 {strides = array<i32>} : memref<1x16xf32, #tpu.memory_space<vmem>>, vector<1x16xf32>,
    } else {
    }
    %c0 = arith.constant 0 : index
    %c0_1 = arith.constant 0 : index
    %3 = vector.load %arg1[%c0, %c0_1] : memref<8x16xf32, #tpu.memory_space<vmem>>, vector<8x16xf32>
    %c0_2 = arith.constant 0 : index
    %c0_3 = arith.constant 0 : index
    %4 = vector.load %arg2[%c0_2, %c0_3] : memref<8x16xf32, #tpu.memory_space<vmem>>, vector<8x16xf32>
    %cst = arith.constant dense<0xFF800000> : vector<8xf32>
    %5 = vector.multi_reduction <maximumf>, %3, %cst [1] : vector<8x16xf32> to vector<8xf32>
    %6 = vector.shape_cast %5 : vector<8xf32> to vector<8x1xf32>
    %7 = vector.broadcast %6 : vector<8x1xf32> to vector<8x16xf32>
    %8 = arith.subf %3, %7 : vector<8x16xf32>
    %9 = math.exp %8 : vector<8x16xf32>
    %cst_4 = arith.constant dense<0.000000e+00> : vector<8xf32>
    %10 = vector.multi_reduction <add>, %9, %cst_4 [1] : vector<8x16xf32> to vector<8xf32>
    %11 = vector.shape_cast %10 : vector<8xf32> to vector<8x1xf32>
    %12 = math.log %11 : vector<8x1xf32>
    %13 = vector.broadcast %12 : vector<8x1xf32> to vector<8x16xf32>
    %14 = arith.subf %13, %8 : vector<8x16xf32>
    %15 = arith.mulf %4, %14 : vector<8x16xf32>
    %cst_5 = arith.constant dense<0.000000e+00> : vector<16xf32>
    %16 = vector.multi_reduction <add>, %15, %cst_5 [0] : vector<8x16xf32> to vector<16xf32>
    %17 = vector.shape_cast %16 : vector<16xf32> to vector<1x16xf32>
    %c0_6 = arith.constant 0 : index
    %c0_7 = arith.constant 0 : index
    %18 = vector.load %arg4[%c0_6, %c0_7] : memref<1x16xf32, #tpu.memory_space<vmem>>, vector<1x16xf32>
    %19 = arith.addf %18, %17 : vector<1x16xf32>
    %c0_8 = arith.constant 0 : index
    %c0_9 = arith.constant 0 : index
    %20 = vector.load %arg4[%c0_8, %c0_9] : memref<1x16xf32, #tpu.memory_space<vmem>>, vector<1x16xf32>
    tpu.vector_store %arg4[%c0_8, %c0_9], %19 {strides = array<i32>} : memref<1x16xf32, #tpu.memory_space<vmem>>, vector<1x16xf32>,
    %c0_i32_10 = arith.constant 0 : i32
    %21 = arith.cmpi eq, %arg0, %c0_i32_10 : i32
    %22 = arith.extui %21 : i1 to i32
    %c0_i32_11 = arith.constant 0 : i32
    %23 = arith.cmpi ne, %22, %c0_i32_11 : i32
    scf.if %23 {
      %c0_12 = arith.constant 0 : index
      %c0_13 = arith.constant 0 : index
      %24 = vector.load %arg4[%c0_12, %c0_13] : memref<1x16xf32, #tpu.memory_space<vmem>>, vector<1x16xf32>
      %cst_14 = arith.constant dense<0.000000e+00> : vector<1xf32>
      %25 = vector.multi_reduction <add>, %24, %cst_14 [1] : vector<1x16xf32> to vector<1xf32>
      %26 = vector.shape_cast %25 : vector<1xf32> to vector<1x1xf32>
      %cst_15 = arith.constant 1.250000e-01 : f32
      %27 = vector.broadcast %cst_15 : f32 to vector<1x1xf32>
      %28 = arith.mulf %26, %27 : vector<1x1xf32>
      %c0_16 = arith.constant 0 : index
      %c0_17 = arith.constant 0 : index
      %29 = vector.load %arg3[%c0_16, %c0_17] : memref<1x1xf32, #tpu.memory_space<vmem>>, vector<1x1xf32>
      tpu.vector_store %arg3[%c0_16, %c0_17], %28 {strides = array<i32>} : memref<1x1xf32, #tpu.memory_space<vmem>>, vector<1x1xf32>,
    } else {
    }
    return
  }
  func.func @transform_0(%arg0: i32) -> (i32, i32) {
    %c0_i32 = arith.constant 0 : i32
    %c0_i32_0 = arith.constant 0 : i32
    return %arg0, %c0_i32 : i32, i32
  }
  func.func @transform_1(%arg0: i32) -> (i32, i32) {
    %c0_i32 = arith.constant 0 : i32
    %c0_i32_0 = arith.constant 0 : i32
    return %arg0, %c0_i32 : i32, i32
  }
  func.func @transform_2(%arg0: i32) -> (i32, i32) {
    %c0_i32 = arith.constant 0 : i32
    %c0_i32_0 = arith.constant 0 : i32
    %c0_i32_1 = arith.constant 0 : i32
    return %c0_i32, %c0_i32_0 : i32, i32
  }
}

</mosaic_0001>

<bundles_post_ra>
// kernel: tpu_custom_call.1
= control target key start
LH: loop header
LB: loop body
LE: loop exit
PB: predicated region body
PF: predicated region fallthrough
CT: control target
= control target key end

     0   :  { %7 = vsyncpa [#allocation4], 0  ;;  %s203_s0 = inlined_call_operand.hbm [shape: f32[8,16], index: 0, kind: input, shape index: {}]   ;;  %s204_s1 = inlined_call_operand.hbm [shape: f32[8,16], index: 1, kind: input, shape index: {}]   ;;  %s205_s2 = inlined_call_operand.hbm [shape: f32[1,1], index: 2, kind: output, shape index: {}]  }
   0x1   :  { %8 = vsyncpa [#allocation7], 0 }
   0x2   :  { %9 = vsyncpa [#allocation5], 0  ;;  %s169_s9 = smov [#allocation3]   ;;  %s170_s11 = smov [#allocation6]  }
   0x3   :  { %s16_s10 = sshll.u32 %s169_s9, 4  ;;  %s26_s12 = sshll.u32 %s170_s11, 4  ;;  %s17_s10 = int_to_ptr.vmem [resolvable:$true] %s16_s10  ;;  %s27_s12 = int_to_ptr.vmem [resolvable:$true] %s26_s12 }
   0x4   :  { %s111_s13 = scalar_lea.vmem %s17_s10, 128  ;;  %p116_p1 = scmp.lt.s32.totalorder %s17_s10, %s17_s10 }
   0x5   :  { %p112_p0 = scmp.ne.s32.totalorder %s17_s10, %s111_s13  ;;  %p117_p2 = scmp.lt.s32.totalorder %s111_s13, %s111_s13 }
   0x7   :  { %p118_p3 = por %p117_p2, %p116_p1 }
   0x9   :  { %p119_p4 = pnand %p118_p3, %p112_p0 }
   0xb   :  { %122 = shalt.err (!%p119_p4)
}
   0xc   :  { %19 = dma.hbm_to_vmem [thread:$0]  %s203_s0, 128, %s17_s10, [#allocation4]  }
   0xd   :  { %s131_s16 = scalar_lea.vmem %s27_s12, 128  ;;  %p136_p6 = scmp.lt.s32.totalorder %s27_s12, %s27_s12 }
   0xe   :  { %p132_p5 = scmp.ne.s32.totalorder %s27_s12, %s131_s16  ;;  %p137_p7 = scmp.lt.s32.totalorder %s131_s16, %s131_s16 }
  0x10   :  { %p138_p8 = por %p137_p7, %p136_p6 }
  0x12   :  { %p139_p9 = pnand %p138_p8, %p132_p5 }
  0x14   :  { %142 = shalt.err (!%p139_p9)
}
  0x15   :  { %29 = dma.hbm_to_vmem [thread:$0]  %s204_s1, 128, %s27_s12, [#allocation7]  }
  0x16   :  { %163 = dma.done.wait [#allocation4], 128  }
  0x17   :  { %164 = vsyncadd [#allocation4], 4294967168 }
  0x18   :  { %165 = dma.done.wait [#allocation7], 128  }
  0x19   :  { %166 = vsyncadd [#allocation7], 4294967168  ;;  %vm44_vm0 = vcmask 130048   ;;  %v42_v0 = vld [vmem:[#allocation3] sm:$0xff]  ;;  %vm40_vm1 = vcmask 122880   ;;  %v171_v7 = vmov 0.0  }
  0x1a   :  { %v45_v1 = vsel %vm44_vm0, %v42_v0, -inf  ;;  %41 = vst.msk [vmem:[#allocation2] sm:$0x1] %vm40_vm1, %v171_v7  ;;  %v43_v11 = vld [vmem:[#allocation6] sm:$0xff]  ;;  %s172_s0 = smov [#allocation8]   ;;  %vm77_vm2 = vcmask 0  }
  0x1b   :  { %46 = vmax.xlane.f32.xlu0 %v45_v1  ;;  %s85_s1 = sshll.u32 %s172_s0, 4  ;;  %s86_s1 = int_to_ptr.vmem [resolvable:$true] %s85_s1 }
  0x1c   :  { %s143_s19 = scalar_lea.vmem %s86_s1, 16  ;;  %s147_s20 = scalar_lea.vmem %s86_s1, 32 }
  0x1d   :  { %p144_p10 = scmp.ne.s32.totalorder %s86_s1, %s143_s19  ;;  %p148_p11 = scmp.lt.s32.totalorder %s86_s1, %s86_s1 }
  0x1e   :  { %p149_p12 = scmp.lt.s32.totalorder %s147_s20, %s143_s19 }
  0x20   :  { %p150_p13 = por %p149_p12, %p148_p11 }
  0x21   :  { %v65_v20 = vld [vmem:[#allocation2] sm:$0x1] }
  0x22   :  { %p151_p0 = pnand %p150_p13, %p144_p10 }
  0xa4   :  { %v47_v2 = vpop.xlane.xlu0 %46 }
  0xa5   :  { %v48_v3 = vsub.f32 %v42_v0, %v47_v2 }
  0xa7   :  { %v49_v4 = vmul.f32 1.442695, %v48_v3 }
  0xa9   :  { %99 = vpow2.f32 %v49_v4 }
  0xb6   :  { %v100_v5 = vpop.eup %99 }
  0xb7   :  { %v51_v6 = vsel %vm44_vm0, %v100_v5, 0.0 }
  0xb8   :  { %52 = vadd.xlane.f32.xlu0 %v51_v6 }
 0x141   :  { %v53_v8 = vpop.xlane.xlu0 %52 }
 0x142   :  { %101 = vlog2.f32 %v53_v8 }
 0x14f   :  { %v102_v9 = vpop.eup %101 }
 0x150   :  { %v55_v10 = vmul.f32 0.6931472, %v102_v9 }
 0x152   :  { %v56_v12 = vsub.f32 %v55_v10, %v48_v3 }
 0x154   :  { %v57_v13 = vmul.f32 %v56_v12, %v43_v11 }
 0x156   :  { %v58_v14 = vsel %vm44_vm0, %v57_v13, 0.0 }
 0x157   :  { %v59_v15 = vrot.slane %v58_v14, 4 }
 0x159   :  { %v60_v16 = vadd.f32 %v59_v15, %v58_v14 }
 0x15b   :  { %v61_v17 = vrot.slane %v60_v16, 2 }
 0x15d   :  { %v62_v18 = vadd.f32 %v61_v17, %v60_v16 }
 0x15f   :  { %v63_v19 = vrot.slane %v62_v18, 1 }
 0x161   :  { %v64_v21 = vadd.f32 %v63_v19, %v62_v18 }
 0x163   :  { %v66_v22 = vadd.f32 %v65_v20, %v64_v21 }
 0x165   :  { %68 = vst.msk [vmem:[#allocation2] sm:$0x1] %vm40_vm1, %v66_v22 }
 0x16c   :  { %v72_v23 = vld [vmem:[#allocation2] sm:$0x1] }
 0x16d   :  { %v73_v24 = vsel %vm40_vm1, %v72_v23, 0.0 }
 0x16e   :  { %74 = vadd.xlane.f32.xlu1 %v73_v24 }
 0x1f7   :  { %v75_v25 = vpop.xlane.xlu1 %74 }
 0x1f8   :  { %v76_v26 = vmul.f32 0.125, %v75_v25 }
 0x1fa   :  { %78 = vst.msk [vmem:[#allocation8] sm:$0x1] %vm77_vm2, %v76_v26 }
 0x1fb   :  { %154 = shalt.err (!%p151_p0)
}
 0x1fc   :  { %88 = dma.vmem_to_hbm [thread:$0]  %s86_s1, 16, %s205_s2, [#allocation5]  }
 0x1fd   :  { %167 = dma.done.wait [#allocation5], 16  }
 0x1fe   :  { %168 = vsyncadd [#allocation5], 4294967280 }
 0x1ff   :  { %92 = vsyncpa [#allocation4], 1 }
 0x200   :  { %93 = vsyncpa [#allocation7], 1 }
 0x201   :  { %94 = vsyncpa [#allocation5], 1 }

</bundles_post_ra>
